<compile_context>
chip_gen: v7x
topology: tpu7x:2x2x1
jax: 0.10.0
libtpu: 0.0.40
codegen_flags: <defaults>
</compile_context>

<pallas_src>
import functools

import jax
import jax.numpy as jnp
from jax.experimental import pallas as pl
from jax.experimental.pallas import tpu as pltpu

BN_EPS = 1e-5


def _round_up(x, m):
    return ((x + m - 1) // m) * m


# --------------------------------------------------------------------------- #
# Per-layer kernel: [fused BN-affine + ReLU of previous layer] -> Linear,
# plus (for hidden layers) per-tile partial BN statistics of the new output.
# --------------------------------------------------------------------------- #
def _make_layer_kernel(is_first, is_last, m_actual, tile_m):
    def kernel(*refs):
        if is_first:
            a_ref, w_ref, b_ref = refs[:3]
            out_refs = refs[3:]
            scale_ref = shift_ref = None
        else:
            a_ref, scale_ref, shift_ref, w_ref, b_ref = refs[:5]
            out_refs = refs[5:]

        a = a_ref[...].astype(jnp.float32)
        if not is_first:
            # Fused BatchNorm (folded to per-feature scale/shift) + ReLU of the
            # previous layer, in f32.
            a = jnp.maximum(a * scale_ref[...] + shift_ref[...], 0.0)

        # bf16 operands, f32 accumulation on the MXU; bias add in f32.
        y = jnp.dot(a.astype(jnp.bfloat16), w_ref[...],
                    preferred_element_type=jnp.float32) + b_ref[...]

        y_ref = out_refs[0]
        y_ref[...] = y.astype(y_ref.dtype)

        if not is_last:
            sum_ref, sq_ref = out_refs[1], out_refs[2]
            d_out = y.shape[1]
            # Mask token-axis padding rows out of the BN statistics.
            row = (pl.program_id(0) * tile_m
                   + jax.lax.broadcasted_iota(jnp.int32, (tile_m, 1), 0))
            yv = jnp.where(row < m_actual, y, 0.0)
            sum_ref[...] = jnp.sum(yv, axis=0, keepdims=True).reshape(1, 1, d_out)
            sq_ref[...] = jnp.sum(yv * yv, axis=0, keepdims=True).reshape(1, 1, d_out)

    return kernel


def _layer_call(a, scale, shift, w, b, *, is_first, is_last, m_actual, tile_m,
                out_dtype, vmem_limit_bytes):
    m_pad, d_in = a.shape
    d_out = w.shape[1]
    n_tiles = m_pad // tile_m

    kernel = _make_layer_kernel(is_first, is_last, m_actual, tile_m)

    # Streamed activation tile + VMEM-resident (constant index_map) parameters.
    in_specs = [pl.BlockSpec((tile_m, d_in), lambda i: (i, 0))]
    inputs = [a]
    if not is_first:
        in_specs += [pl.BlockSpec((1, d_in), lambda i: (0, 0)),
                     pl.BlockSpec((1, d_in), lambda i: (0, 0))]
        inputs += [scale, shift]
    in_specs += [pl.BlockSpec((d_in, d_out), lambda i: (0, 0)),
                 pl.BlockSpec((1, d_out), lambda i: (0, 0))]
    inputs += [w, b]

    if is_last:
        out_shape = jax.ShapeDtypeStruct((m_pad, d_out), out_dtype)
        out_specs = pl.BlockSpec((tile_m, d_out), lambda i: (i, 0))
    else:
        out_shape = (jax.ShapeDtypeStruct((m_pad, d_out), out_dtype),
                     jax.ShapeDtypeStruct((n_tiles, 1, d_out), jnp.float32),
                     jax.ShapeDtypeStruct((n_tiles, 1, d_out), jnp.float32))
        out_specs = (pl.BlockSpec((tile_m, d_out), lambda i: (i, 0)),
                     pl.BlockSpec((1, 1, d_out), lambda i: (i, 0, 0)),
                     pl.BlockSpec((1, 1, d_out), lambda i: (i, 0, 0)))

    return pl.pallas_call(
        kernel,
        grid=(n_tiles,),
        in_specs=in_specs,
        out_specs=out_specs,
        out_shape=out_shape,
        compiler_params=pltpu.CompilerParams(
            dimension_semantics=("parallel",),
            vmem_limit_bytes=vmem_limit_bytes,
        ),
    )(*inputs)


def _choose_tile_m(m, max_dim, requested=512, budget_bytes=24 * 1024 * 1024):
    """Largest multiple-of-8 row tile <= requested whose double-buffered in/out
    activation tiles fit a VMEM budget that is also safe on v7x (64 MiB)."""
    t = _round_up(min(requested, _round_up(m, 8)), 8)
    while t > 8 and 2 * 2 * t * max_dim * 4 > budget_bytes:
        t = _round_up(t // 2, 8)
    return max(t, 8)


@functools.partial(jax.jit, static_argnames=("num_layers", "output_dim", "tile_m"))
def mlp_forward(x, weights, biases, gammas, betas, *, num_layers, output_dim,
                tile_m=512):
    """x: (B, N, D) float32.  Returns (B, N, output_dim) float32."""
    B, N, D = x.shape
    M = B * N

    dims = [D] + [w.shape[1] for w in weights]
    max_dim = max(_round_up(d, 128) for d in dims)

    tm = _choose_tile_m(M, max_dim, requested=tile_m)
    m_pad = _round_up(M, tm)

    # Explicit VMEM budget: 2-deep pipelined activation tiles + resident params.
    est = (2 * 2 * tm * max_dim * 4        # in/out activation tiles (f32 worst case)
           + 2 * max_dim * max_dim * 2     # bf16 weight (with slack)
           + 8 * max_dim * 4)              # bias / scale / shift / partial stats
    vmem_limit = int(min(max(2 * est, 32 * 1024 * 1024), 48 * 1024 * 1024))

    # ---- pad (lane-dense, multiples of 128) & cast parameters; zero padding
    # ---- keeps the math exact (gamma/beta padded with 0 -> padded lanes stay 0).
    d0 = _round_up(D, 128)
    a = jnp.pad(x.reshape(M, D).astype(jnp.float32),
                ((0, m_pad - M), (0, d0 - D)))

    w_p, b_p, g_p, be_p = [], [], [], []
    for i in range(num_layers):
        n, k = weights[i].shape
        n_pad, k_pad = _round_up(n, 128), _round_up(k, 128)
        w_p.append(jnp.pad(weights[i], ((0, n_pad - n), (0, k_pad - k)))
                   .astype(jnp.bfloat16))
        b_p.append(jnp.pad(biases[i].reshape(1, k),
                           ((0, 0), (0, k_pad - k))).astype(jnp.float32))
        if i < num_layers - 1:
            g_p.append(jnp.pad(gammas[i].reshape(1, k), ((0, 0), (0, k_pad - k))))
            be_p.append(jnp.pad(betas[i].reshape(1, k), ((0, 0), (0, k_pad - k))))

    scale = shift = None
    y = None
    for i in range(num_layers):
        is_first = i == 0
        is_last = i == num_layers - 1
        outs = _layer_call(
            a, scale, shift, w_p[i], b_p[i],
            is_first=is_first, is_last=is_last, m_actual=M, tile_m=tm,
            out_dtype=jnp.float32 if is_last else jnp.bfloat16,
            vmem_limit_bytes=vmem_limit)
        if is_last:
            y = outs
        else:
            y, psum, psq = outs
            # Tiny per-feature reduction + BN fold (training-mode batch stats).
            s = jnp.sum(psum[:, 0, :], axis=0, keepdims=True)       # (1, k_pad)
            s2 = jnp.sum(psq[:, 0, :], axis=0, keepdims=True)
            mean = s / M
            var = jnp.maximum(s2 / M - mean * mean, 0.0)            # biased var
            scale = g_p[i] * jax.lax.rsqrt(var + BN_EPS)
            shift = be_p[i] - mean * scale
            a = y

    return y[:M, :output_dim].reshape(B, N, output_dim)


# --------------------------------------------------------------------------- #
# References
# --------------------------------------------------------------------------- #
def _reference_forward_f32(x, weights, biases, gammas, betas, num_layers,
                           output_dim):
    """Exact (f32) forward of the PyTorch module semantics."""
    B, N, D = x.shape
    h = x.reshape(B * N, D).astype(jnp.float32)
    for i in range(num_layers):
        h = h @ weights[i] + biases[i].reshape(1, -1)
        if i < num_layers - 1:
            mean = jnp.mean(h, axis=0, keepdims=True)
            var = jnp.mean((h - mean) ** 2, axis=0, keepdims=True)
            h = ((h - mean) * jax.lax.rsqrt(var + BN_EPS)
                 * gammas[i].reshape(1, -1) + betas[i].reshape(1, -1))
            h = jnp.maximum(h, 0.0)
    return h.reshape(B, N, output_dim)


def _reference_forward_bf16(x, weights, biases, gammas, betas, num_layers,
                            output_dim):
    """Mirrors the kernel's numerics (bf16 matmul operands, bf16-stored hidden
    activations, f32 accumulation and f32 BN math) for a tight check."""
    B, N, D = x.shape
    a = x.reshape(B * N, D).astype(jnp.float32)
    for i in range(num_layers):
        y = jnp.dot(a.astype(jnp.bfloat16), weights[i].astype(jnp.bfloat16),
                    preferred_element_type=jnp.float32) + biases[i].reshape(1, -1)
        if i < num_layers - 1:
            mean = jnp.mean(y, axis=0, keepdims=True)
            var = jnp.maximum(jnp.mean(y * y, axis=0, keepdims=True)
                              - mean * mean, 0.0)
            scale = gammas[i].reshape(1, -1) * jax.lax.rsqrt(var + BN_EPS)
            shift = betas[i].reshape(1, -1) - mean * scale
            y16 = y.astype(jnp.bfloat16).astype(jnp.float32)
            a = jnp.maximum(y16 * scale + shift, 0.0)
        else:
            a = y
    return a.reshape(B, N, output_dim)


def init_params(key, input_dim, hidden_dim, output_dim, num_layers):
    """Shapes matching the PyTorch module.  nn.Linear(n, k): weight (k, n),
    bias (k,), uniform(-1/sqrt(n), 1/sqrt(n)); stored transposed as (n, k) for
    the x @ W layout.  nn.BatchNorm1d: gamma=1, beta=0.  1-row 2-D vectors."""
    dims_in = [input_dim] + [hidden_dim] * (num_layers - 1)
    dims_out = [hidden_dim] * (num_layers - 1) + [output_dim]

    weights, biases, gammas, betas = [], [], [], []
    for i, (n, k) in enumerate(zip(dims_in, dims_out)):
        key, wk, bk = jax.random.split(key, 3)
        bound = 1.0 / jnp.sqrt(n)
        weights.append(jax.random.uniform(wk, (n, k), jnp.float32, -bound, bound))
        biases.append(jax.random.uniform(bk, (1, k), jnp.float32, -bound, bound))
        if i < num_layers - 1:
            gammas.append(jnp.ones((1, k), jnp.float32))
            betas.append(jnp.zeros((1, k), jnp.float32))
    return tuple(weights), tuple(biases), tuple(gammas), tuple(betas)


if __name__ == "__main__":
    B, N = 2, 8
    input_dim, hidden_dim, output_dim, num_layers = 32, 64, 16, 3

    key = jax.random.PRNGKey(0)
    key, xk, pk = jax.random.split(key, 3)
    x = jax.random.normal(xk, (B, N, input_dim), jnp.float32)
    weights, biases, gammas, betas = init_params(
        pk, input_dim, hidden_dim, output_dim, num_layers)

    out = mlp_forward(x, weights, biases, gammas, betas,
                      num_layers=num_layers, output_dim=output_dim)
    out = jax.block_until_ready(out)
    assert out.shape == (B, N, output_dim), out.shape

    ref16 = _reference_forward_bf16(x, weights, biases, gammas, betas,
                                    num_layers, output_dim)
    assert jnp.allclose(out, ref16, atol=2e-3, rtol=2e-3), \
        "mismatch vs bf16-mirrored reference"

    ref32 = _reference_forward_f32(x, weights, biases, gammas, betas,
                                   num_layers, output_dim)
    assert jnp.allclose(out, ref32, atol=5e-2, rtol=5e-2), \
        "mismatch vs f32 module reference"

    print("KERNEL_OK")
</pallas_src>

<mosaic_0001>
module attributes {stable_mosaic.version = 11 : i64} {
  func.func @kernel(%arg0: i32, %arg1: memref<16x128xbf16, #tpu.memory_space<vmem>>, %arg2: memref<1x128xf32, #tpu.memory_space<vmem>>, %arg3: memref<1x128xf32, #tpu.memory_space<vmem>>, %arg4: memref<128x128xbf16, #tpu.memory_space<vmem>>, %arg5: memref<1x128xf32, #tpu.memory_space<vmem>>, %arg6: memref<16x128xf32, #tpu.memory_space<vmem>>) attributes {dimension_semantics = [#tpu.dimension_semantics<parallel>], iteration_bounds = array<i64: 1>, scalar_prefetch = 0 : i64, scratch_operands = 0 : i64, tpu.core_type = #tpu.core_type<tc>, window_params = [{transform_indices = @transform_0, window_bounds = array<i64: 16, 128>}, {pipeline_mode = #tpu.pipeline_mode<synchronous>, transform_indices = @transform_1, window_bounds = array<i64: 1, 128>}, {pipeline_mode = #tpu.pipeline_mode<synchronous>, transform_indices = @transform_2, window_bounds = array<i64: 1, 128>}, {pipeline_mode = #tpu.pipeline_mode<synchronous>, transform_indices = @transform_3, window_bounds = array<i64: 128, 128>}, {pipeline_mode = #tpu.pipeline_mode<synchronous>, transform_indices = @transform_4, window_bounds = array<i64: 1, 128>}, {transform_indices = @transform_5, window_bounds = array<i64: 16, 128>}]} {
    %c0 = arith.constant 0 : index
    %c0_0 = arith.constant 0 : index
    %0 = vector.load %arg1[%c0, %c0_0] : memref<16x128xbf16, #tpu.memory_space<vmem>>, vector<16x128xbf16>
    %1 = arith.extf %0 : vector<16x128xbf16> to vector<16x128xf32>
    %c0_1 = arith.constant 0 : index
    %c0_2 = arith.constant 0 : index
    %2 = vector.load %arg2[%c0_1, %c0_2] : memref<1x128xf32, #tpu.memory_space<vmem>>, vector<1x128xf32>
    %3 = vector.broadcast %2 : vector<1x128xf32> to vector<16x128xf32>
    %4 = arith.mulf %1, %3 : vector<16x128xf32>
    %c0_3 = arith.constant 0 : index
    %c0_4 = arith.constant 0 : index
    %5 = vector.load %arg3[%c0_3, %c0_4] : memref<1x128xf32, #tpu.memory_space<vmem>>, vector<1x128xf32>
    %6 = vector.broadcast %5 : vector<1x128xf32> to vector<16x128xf32>
    %7 = arith.addf %4, %6 : vector<16x128xf32>
    %cst = arith.constant 0.000000e+00 : f32
    %8 = vector.broadcast %cst : f32 to vector<16x128xf32>
    %9 = arith.maximumf %7, %8 : vector<16x128xf32>
    %10 = arith.truncf %9 : vector<16x128xf32> to vector<16x128xbf16>
    %c0_5 = arith.constant 0 : index
    %c0_6 = arith.constant 0 : index
    %11 = vector.load %arg4[%c0_5, %c0_6] : memref<128x128xbf16, #tpu.memory_space<vmem>>, vector<128x128xbf16>
    %cst_7 = arith.constant dense<0.000000e+00> : vector<16x128xf32>
    %12 = tpu.matmul %10, %11, %cst_7 {dimension_numbers = #tpu.dot_dimension_numbers<[1], [0], [0], [1], [0, 0, 1, 1], [], []>} : vector<16x128xbf16>, vector<128x128xbf16>, vector<16x128xf32> -> vector<16x128xf32>
    %c0_8 = arith.constant 0 : index
    %c0_9 = arith.constant 0 : index
    %13 = vector.load %arg5[%c0_8, %c0_9] : memref<1x128xf32, #tpu.memory_space<vmem>>, vector<1x128xf32>
    %14 = vector.broadcast %13 : vector<1x128xf32> to vector<16x128xf32>
    %15 = arith.addf %12, %14 : vector<16x128xf32>
    %c0_10 = arith.constant 0 : index
    %c0_11 = arith.constant 0 : index
    %16 = vector.load %arg6[%c0_10, %c0_11] : memref<16x128xf32, #tpu.memory_space<vmem>>, vector<16x128xf32>
    tpu.vector_store %arg6[%c0_10, %c0_11], %15 {strides = array<i32>} : memref<16x128xf32, #tpu.memory_space<vmem>>, vector<16x128xf32>,
    return
  }
  func.func @transform_0(%arg0: i32) -> (i32, i32) {
    %c0_i32 = arith.constant 0 : i32
    %c0_i32_0 = arith.constant 0 : i32
    return %arg0, %c0_i32 : i32, i32
  }
  func.func @transform_1(%arg0: i32) -> (i32, i32) {
    %c0_i32 = arith.constant 0 : i32
    %c0_i32_0 = arith.constant 0 : i32
    %c0_i32_1 = arith.constant 0 : i32
    return %c0_i32, %c0_i32_0 : i32, i32
  }
  func.func @transform_2(%arg0: i32) -> (i32, i32) {
    %c0_i32 = arith.constant 0 : i32
    %c0_i32_0 = arith.constant 0 : i32
    %c0_i32_1 = arith.constant 0 : i32
    return %c0_i32, %c0_i32_0 : i32, i32
  }
  func.func @transform_3(%arg0: i32) -> (i32, i32) {
    %c0_i32 = arith.constant 0 : i32
    %c0_i32_0 = arith.constant 0 : i32
    %c0_i32_1 = arith.constant 0 : i32
    return %c0_i32, %c0_i32_0 : i32, i32
  }
  func.func @transform_4(%arg0: i32) -> (i32, i32) {
    %c0_i32 = arith.constant 0 : i32
    %c0_i32_0 = arith.constant 0 : i32
    %c0_i32_1 = arith.constant 0 : i32
    return %c0_i32, %c0_i32_0 : i32, i32
  }
  func.func @transform_5(%arg0: i32) -> (i32, i32) {
    %c0_i32 = arith.constant 0 : i32
    %c0_i32_0 = arith.constant 0 : i32
    return %arg0, %c0_i32 : i32, i32
  }
}

module attributes {stable_mosaic.version = 11 : i64} {
  func.func @kernel(%arg0: i32, %arg1: memref<16x128xf32, #tpu.memory_space<vmem>>, %arg2: memref<128x128xbf16, #tpu.memory_space<vmem>>, %arg3: memref<1x128xf32, #tpu.memory_space<vmem>>, %arg4: memref<16x128xbf16, #tpu.memory_space<vmem>>, %arg5: memref<1x1x128xf32, #tpu.memory_space<vmem>>, %arg6: memref<1x1x128xf32, #tpu.memory_space<vmem>>) attributes {dimension_semantics = [#tpu.dimension_semantics<parallel>], iteration_bounds = array<i64: 1>, scalar_prefetch = 0 : i64, scratch_operands = 0 : i64, tpu.core_type = #tpu.core_type<tc>, window_params = [{transform_indices = @transform_0, window_bounds = array<i64: 16, 128>}, {pipeline_mode = #tpu.pipeline_mode<synchronous>, transform_indices = @transform_1, window_bounds = array<i64: 128, 128>}, {pipeline_mode = #tpu.pipeline_mode<synchronous>, transform_indices = @transform_2, window_bounds = array<i64: 1, 128>}, {transform_indices = @transform_3, window_bounds = array<i64: 16, 128>}, {transform_indices = @transform_4, window_bounds = array<i64: 1, 1, 128>}, {transform_indices = @transform_5, window_bounds = array<i64: 1, 1, 128>}]} {
    %c0 = arith.constant 0 : index
    %c0_0 = arith.constant 0 : index
    %0 = vector.load %arg1[%c0, %c0_0] : memref<16x128xf32, #tpu.memory_space<vmem>>, vector<16x128xf32>
    %1 = arith.truncf %0 : vector<16x128xf32> to vector<16x128xbf16>
    %c0_1 = arith.constant 0 : index
    %c0_2 = arith.constant 0 : index
    %2 = vector.load %arg2[%c0_1, %c0_2] : memref<128x128xbf16, #tpu.memory_space<vmem>>, vector<128x128xbf16>
    %cst = arith.constant dense<0.000000e+00> : vector<16x128xf32>
    %3 = tpu.matmul %1, %2, %cst {dimension_numbers = #tpu.dot_dimension_numbers<[1], [0], [0], [1], [0, 0, 1, 1], [], []>} : vector<16x128xbf16>, vector<128x128xbf16>, vector<16x128xf32> -> vector<16x128xf32>
    %c0_3 = arith.constant 0 : index
    %c0_4 = arith.constant 0 : index
    %4 = vector.load %arg3[%c0_3, %c0_4] : memref<1x128xf32, #tpu.memory_space<vmem>>, vector<1x128xf32>
    %5 = vector.broadcast %4 : vector<1x128xf32> to vector<16x128xf32>
    %6 = arith.addf %3, %5 : vector<16x128xf32>
    %7 = arith.truncf %6 : vector<16x128xf32> to vector<16x128xbf16>
    %c0_5 = arith.constant 0 : index
    %c0_6 = arith.constant 0 : index
    %8 = vector.load %arg4[%c0_5, %c0_6] : memref<16x128xbf16, #tpu.memory_space<vmem>>, vector<16x128xbf16>
    tpu.vector_store %arg4[%c0_5, %c0_6], %7 {strides = array<i32>} : memref<16x128xbf16, #tpu.memory_space<vmem>>, vector<16x128xbf16>,
    %c16_i32 = arith.constant 16 : i32
    %9 = arith.muli %arg0, %c16_i32 : i32
    %10 = tpu.iota {dimensions = array<i32: 0>} : vector<16x1xi32>
    %11 = vector.broadcast %9 : i32 to vector<16x1xi32>
    %12 = arith.addi %11, %10 : vector<16x1xi32>
    %c16_i32_7 = arith.constant 16 : i32
    %13 = vector.broadcast %c16_i32_7 : i32 to vector<16x1xi32>
    %14 = arith.cmpi slt, %12, %13 : vector<16x1xi32>
    %cst_8 = arith.constant 0.000000e+00 : f32
    %15 = vector.shape_cast %14 : vector<16x1xi1> to vector<16x1xi1>
    %16 = vector.broadcast %15 : vector<16x1xi1> to vector<16x128xi1>
    %17 = vector.broadcast %cst_8 : f32 to vector<16x128xf32>
    %18 = arith.select %16, %6, %17 : vector<16x128xi1>, vector<16x128xf32>
    %cst_9 = arith.constant dense<0.000000e+00> : vector<128xf32>
    %19 = vector.multi_reduction <add>, %18, %cst_9 [0] : vector<16x128xf32> to vector<128xf32>
    %20 = vector.shape_cast %19 : vector<128xf32> to vector<1x128xf32>
    %21 = vector.shape_cast %20 : vector<1x128xf32> to vector<1x1x128xf32>
    %c0_10 = arith.constant 0 : index
    %c0_11 = arith.constant 0 : index
    %c0_12 = arith.constant 0 : index
    %22 = vector.load %arg5[%c0_10, %c0_11, %c0_12] : memref<1x1x128xf32, #tpu.memory_space<vmem>>, vector<1x1x128xf32>
    tpu.vector_store %arg5[%c0_10, %c0_11, %c0_12], %21 {strides = array<i32>} : memref<1x1x128xf32, #tpu.memory_space<vmem>>, vector<1x1x128xf32>,
    %23 = arith.mulf %18, %18 : vector<16x128xf32>
    %cst_13 = arith.constant dense<0.000000e+00> : vector<128xf32>
    %24 = vector.multi_reduction <add>, %23, %cst_13 [0] : vector<16x128xf32> to vector<128xf32>
    %25 = vector.shape_cast %24 : vector<128xf32> to vector<1x128xf32>
    %26 = vector.shape_cast %25 : vector<1x128xf32> to vector<1x1x128xf32>
    %c0_14 = arith.constant 0 : index
    %c0_15 = arith.constant 0 : index
    %c0_16 = arith.constant 0 : index
    %27 = vector.load %arg6[%c0_14, %c0_15, %c0_16] : memref<1x1x128xf32, #tpu.memory_space<vmem>>, vector<1x1x128xf32>
    tpu.vector_store %arg6[%c0_14, %c0_15, %c0_16], %26 {strides = array<i32>} : memref<1x1x128xf32, #tpu.memory_space<vmem>>, vector<1x1x128xf32>,
    return
  }
  func.func @transform_0(%arg0: i32) -> (i32, i32) {
    %c0_i32 = arith.constant 0 : i32
    %c0_i32_0 = arith.constant 0 : i32
    return %arg0, %c0_i32 : i32, i32
  }
  func.func @transform_1(%arg0: i32) -> (i32, i32) {
    %c0_i32 = arith.constant 0 : i32
    %c0_i32_0 = arith.constant 0 : i32
    %c0_i32_1 = arith.constant 0 : i32
    return %c0_i32, %c0_i32_0 : i32, i32
  }
  func.func @transform_2(%arg0: i32) -> (i32, i32) {
    %c0_i32 = arith.constant 0 : i32
    %c0_i32_0 = arith.constant 0 : i32
    %c0_i32_1 = arith.constant 0 : i32
    return %c0_i32, %c0_i32_0 : i32, i32
  }
  func.func @transform_3(%arg0: i32) -> (i32, i32) {
    %c0_i32 = arith.constant 0 : i32
    %c0_i32_0 = arith.constant 0 : i32
    return %arg0, %c0_i32 : i32, i32
  }
  func.func @transform_4(%arg0: i32) -> (i32, i32, i32) {
    %c0_i32 = arith.constant 0 : i32
    %c0_i32_0 = arith.constant 0 : i32
    %c0_i32_1 = arith.constant 0 : i32
    return %arg0, %c0_i32, %c0_i32_0 : i32, i32, i32
  }
  func.func @transform_5(%arg0: i32) -> (i32, i32, i32) {
    %c0_i32 = arith.constant 0 : i32
    %c0_i32_0 = arith.constant 0 : i32
    %c0_i32_1 = arith.constant 0 : i32
    return %arg0, %c0_i32, %c0_i32_0 : i32, i32, i32
  }
}

module attributes {stable_mosaic.version = 11 : i64} {
  func.func @kernel(%arg0: i32, %arg1: memref<16x128xbf16, #tpu.memory_space<vmem>>, %arg2: memref<1x128xf32, #tpu.memory_space<vmem>>, %arg3: memref<1x128xf32, #tpu.memory_space<vmem>>, %arg4: memref<128x128xbf16, #tpu.memory_space<vmem>>, %arg5: memref<1x128xf32, #tpu.memory_space<vmem>>, %arg6: memref<16x128xbf16, #tpu.memory_space<vmem>>, %arg7: memref<1x1x128xf32, #tpu.memory_space<vmem>>, %arg8: memref<1x1x128xf32, #tpu.memory_space<vmem>>) attributes {dimension_semantics = [#tpu.dimension_semantics<parallel>], iteration_bounds = array<i64: 1>, scalar_prefetch = 0 : i64, scratch_operands = 0 : i64, tpu.core_type = #tpu.core_type<tc>, window_params = [{transform_indices = @transform_0, window_bounds = array<i64: 16, 128>}, {pipeline_mode = #tpu.pipeline_mode<synchronous>, transform_indices = @transform_1, window_bounds = array<i64: 1, 128>}, {pipeline_mode = #tpu.pipeline_mode<synchronous>, transform_indices = @transform_2, window_bounds = array<i64: 1, 128>}, {pipeline_mode = #tpu.pipeline_mode<synchronous>, transform_indices = @transform_3, window_bounds = array<i64: 128, 128>}, {pipeline_mode = #tpu.pipeline_mode<synchronous>, transform_indices = @transform_4, window_bounds = array<i64: 1, 128>}, {transform_indices = @transform_5, window_bounds = array<i64: 16, 128>}, {transform_indices = @transform_6, window_bounds = array<i64: 1, 1, 128>}, {transform_indices = @transform_7, window_bounds = array<i64: 1, 1, 128>}]} {
    %c0 = arith.constant 0 : index
    %c0_0 = arith.constant 0 : index
    %0 = vector.load %arg1[%c0, %c0_0] : memref<16x128xbf16, #tpu.memory_space<vmem>>, vector<16x128xbf16>
    %1 = arith.extf %0 : vector<16x128xbf16> to vector<16x128xf32>
    %c0_1 = arith.constant 0 : index
    %c0_2 = arith.constant 0 : index
    %2 = vector.load %arg2[%c0_1, %c0_2] : memref<1x128xf32, #tpu.memory_space<vmem>>, vector<1x128xf32>
    %3 = vector.broadcast %2 : vector<1x128xf32> to vector<16x128xf32>
    %4 = arith.mulf %1, %3 : vector<16x128xf32>
    %c0_3 = arith.constant 0 : index
    %c0_4 = arith.constant 0 : index
    %5 = vector.load %arg3[%c0_3, %c0_4] : memref<1x128xf32, #tpu.memory_space<vmem>>, vector<1x128xf32>
    %6 = vector.broadcast %5 : vector<1x128xf32> to vector<16x128xf32>
    %7 = arith.addf %4, %6 : vector<16x128xf32>
    %cst = arith.constant 0.000000e+00 : f32
    %8 = vector.broadcast %cst : f32 to vector<16x128xf32>
    %9 = arith.maximumf %7, %8 : vector<16x128xf32>
    %10 = arith.truncf %9 : vector<16x128xf32> to vector<16x128xbf16>
    %c0_5 = arith.constant 0 : index
    %c0_6 = arith.constant 0 : index
    %11 = vector.load %arg4[%c0_5, %c0_6] : memref<128x128xbf16, #tpu.memory_space<vmem>>, vector<128x128xbf16>
    %cst_7 = arith.constant dense<0.000000e+00> : vector<16x128xf32>
    %12 = tpu.matmul %10, %11, %cst_7 {dimension_numbers = #tpu.dot_dimension_numbers<[1], [0], [0], [1], [0, 0, 1, 1], [], []>} : vector<16x128xbf16>, vector<128x128xbf16>, vector<16x128xf32> -> vector<16x128xf32>
    %c0_8 = arith.constant 0 : index
    %c0_9 = arith.constant 0 : index
    %13 = vector.load %arg5[%c0_8, %c0_9] : memref<1x128xf32, #tpu.memory_space<vmem>>, vector<1x128xf32>
    %14 = vector.broadcast %13 : vector<1x128xf32> to vector<16x128xf32>
    %15 = arith.addf %12, %14 : vector<16x128xf32>
    %16 = arith.truncf %15 : vector<16x128xf32> to vector<16x128xbf16>
    %c0_10 = arith.constant 0 : index
    %c0_11 = arith.constant 0 : index
    %17 = vector.load %arg6[%c0_10, %c0_11] : memref<16x128xbf16, #tpu.memory_space<vmem>>, vector<16x128xbf16>
    tpu.vector_store %arg6[%c0_10, %c0_11], %16 {strides = array<i32>} : memref<16x128xbf16, #tpu.memory_space<vmem>>, vector<16x128xbf16>,
    %c16_i32 = arith.constant 16 : i32
    %18 = arith.muli %arg0, %c16_i32 : i32
    %19 = tpu.iota {dimensions = array<i32: 0>} : vector<16x1xi32>
    %20 = vector.broadcast %18 : i32 to vector<16x1xi32>
    %21 = arith.addi %20, %19 : vector<16x1xi32>
    %c16_i32_12 = arith.constant 16 : i32
    %22 = vector.broadcast %c16_i32_12 : i32 to vector<16x1xi32>
    %23 = arith.cmpi slt, %21, %22 : vector<16x1xi32>
    %cst_13 = arith.constant 0.000000e+00 : f32
    %24 = vector.shape_cast %23 : vector<16x1xi1> to vector<16x1xi1>
    %25 = vector.broadcast %24 : vector<16x1xi1> to vector<16x128xi1>
    %26 = vector.broadcast %cst_13 : f32 to vector<16x128xf32>
    %27 = arith.select %25, %15, %26 : vector<16x128xi1>, vector<16x128xf32>
    %cst_14 = arith.constant dense<0.000000e+00> : vector<128xf32>
    %28 = vector.multi_reduction <add>, %27, %cst_14 [0] : vector<16x128xf32> to vector<128xf32>
    %29 = vector.shape_cast %28 : vector<128xf32> to vector<1x128xf32>
    %30 = vector.shape_cast %29 : vector<1x128xf32> to vector<1x1x128xf32>
    %c0_15 = arith.constant 0 : index
    %c0_16 = arith.constant 0 : index
    %c0_17 = arith.constant 0 : index
    %31 = vector.load %arg7[%c0_15, %c0_16, %c0_17] : memref<1x1x128xf32, #tpu.memory_space<vmem>>, vector<1x1x128xf32>
    tpu.vector_store %arg7[%c0_15, %c0_16, %c0_17], %30 {strides = array<i32>} : memref<1x1x128xf32, #tpu.memory_space<vmem>>, vector<1x1x128xf32>,
    %32 = arith.mulf %27, %27 : vector<16x128xf32>
    %cst_18 = arith.constant dense<0.000000e+00> : vector<128xf32>
    %33 = vector.multi_reduction <add>, %32, %cst_18 [0] : vector<16x128xf32> to vector<128xf32>
    %34 = vector.shape_cast %33 : vector<128xf32> to vector<1x128xf32>
    %35 = vector.shape_cast %34 : vector<1x128xf32> to vector<1x1x128xf32>
    %c0_19 = arith.constant 0 : index
    %c0_20 = arith.constant 0 : index
    %c0_21 = arith.constant 0 : index
    %36 = vector.load %arg8[%c0_19, %c0_20, %c0_21] : memref<1x1x128xf32, #tpu.memory_space<vmem>>, vector<1x1x128xf32>
    tpu.vector_store %arg8[%c0_19, %c0_20, %c0_21], %35 {strides = array<i32>} : memref<1x1x128xf32, #tpu.memory_space<vmem>>, vector<1x1x128xf32>,
    return
  }
  func.func @transform_0(%arg0: i32) -> (i32, i32) {
    %c0_i32 = arith.constant 0 : i32
    %c0_i32_0 = arith.constant 0 : i32
    return %arg0, %c0_i32 : i32, i32
  }
  func.func @transform_1(%arg0: i32) -> (i32, i32) {
    %c0_i32 = arith.constant 0 : i32
    %c0_i32_0 = arith.constant 0 : i32
    %c0_i32_1 = arith.constant 0 : i32
    return %c0_i32, %c0_i32_0 : i32, i32
  }
  func.func @transform_2(%arg0: i32) -> (i32, i32) {
    %c0_i32 = arith.constant 0 : i32
    %c0_i32_0 = arith.constant 0 : i32
    %c0_i32_1 = arith.constant 0 : i32
    return %c0_i32, %c0_i32_0 : i32, i32
  }
  func.func @transform_3(%arg0: i32) -> (i32, i32) {
    %c0_i32 = arith.constant 0 : i32
    %c0_i32_0 = arith.constant 0 : i32
    %c0_i32_1 = arith.constant 0 : i32
    return %c0_i32, %c0_i32_0 : i32, i32
  }
  func.func @transform_4(%arg0: i32) -> (i32, i32) {
    %c0_i32 = arith.constant 0 : i32
    %c0_i32_0 = arith.constant 0 : i32
    %c0_i32_1 = arith.constant 0 : i32
    return %c0_i32, %c0_i32_0 : i32, i32
  }
  func.func @transform_5(%arg0: i32) -> (i32, i32) {
    %c0_i32 = arith.constant 0 : i32
    %c0_i32_0 = arith.constant 0 : i32
    return %arg0, %c0_i32 : i32, i32
  }
  func.func @transform_6(%arg0: i32) -> (i32, i32, i32) {
    %c0_i32 = arith.constant 0 : i32
    %c0_i32_0 = arith.constant 0 : i32
    %c0_i32_1 = arith.constant 0 : i32
    return %arg0, %c0_i32, %c0_i32_0 : i32, i32, i32
  }
  func.func @transform_7(%arg0: i32) -> (i32, i32, i32) {
    %c0_i32 = arith.constant 0 : i32
    %c0_i32_0 = arith.constant 0 : i32
    %c0_i32_1 = arith.constant 0 : i32
    return %arg0, %c0_i32, %c0_i32_0 : i32, i32, i32
  }
}

</mosaic_0001>

<bundles_post_ra>
// kernel: mlp_forward.4
= control target key start
LH: loop header
LB: loop body
LE: loop exit
PB: predicated region body
PF: predicated region fallthrough
CT: control target
= control target key end

     0   :  { %v279_v0 = vmov 0.0   ;;  %vm280_vm0 = vmmov 0   ;;  %s366_s3 = inlined_call_operand.vmem [shape: bf16[128,128], index: 3, kind: input, shape index: {}]   ;;  %s367_s0 = inlined_call_operand.vmem [shape: bf16[16,128], index: 0, kind: input, shape index: {}]   ;;  %s368_s1 = inlined_call_operand.vmem [shape: f32[1,128], index: 1, kind: input, shape index: {}]   ;;  %s369_s2 = inlined_call_operand.vmem [shape: f32[1,128], index: 2, kind: input, shape index: {}]   ;;  %s370_s4 = inlined_call_operand.vmem [shape: f32[1,128], index: 4, kind: input, shape index: {}]   ;;  %s371_s5 = inlined_call_operand.vmem [shape: bf16[16,128], index: 5, kind: output, shape index: {0}]   ;;  %s372_s6 = inlined_call_operand.vmem [shape: f32[1,1,128], index: 6, kind: output, shape index: {1}]   ;;  %s373_s7 = inlined_call_operand.vmem [shape: f32[1,1,128], index: 7, kind: output, shape index: {2}]  }
   0x1   :  { %249 = vmatprep.subr.bf16.mxu0 %v279_v0  ;;  %v271_v1 = vld [vmem:[%s366_s3] sm:$0xff]   ;;  %265 = vmatprep.mubr.msk.bf16.mxu0 %vm280_vm0, %v279_v0  ;;  %v272_v2 = vld [vmem:[%s366_s3 + $0x8] sm:$0xff]   ;;  %v273_v3 = vld [vmem:[%s366_s3 + $0x10] sm:$0xff]  }
   0x2   :  { %250 = vmatpush3.bf16.msra.mxu0 %v271_v1  ;;  %v274_v4 = vld [vmem:[%s366_s3 + $0x18] sm:$0xff]   ;;  %v232_v5 = vld [vmem:[%s367_s0] sm:$0xff]   ;;  %v276_v12 = vld [vmem:[%s366_s3 + $0x28] sm:$0xff]  }
   0x3   :  { %251 = vmatprep.subr.bf16.mxu0 %v279_v0  ;;  %v233_v6 = vunpack.c.l.bf16 %v232_v5  ;;  %v234_v7 = vunpack.c.h.bf16 %v232_v5  ;;  %v275_v8 = vld [vmem:[%s366_s3 + $0x20] sm:$0xff]   ;;  %v277_v16 = vld [vmem:[%s366_s3 + $0x30] sm:$0xff]   ;;  %v278_v19 = vld [vmem:[%s366_s3 + $0x38] sm:$0xff]  }
   0x4   :  { %v216_v9 = vld [vmem:[%s368_s1] ss:$0 sm:$0xff] }
   0x5   :  { %v35_v10 = vmul.f32 %v233_v6, %v216_v9  ;;  %v36_v11 = vmul.f32 %v234_v7, %v216_v9  ;;  %v217_v13 = vld [vmem:[%s369_s2] ss:$0 sm:$0xff] }
   0x6   :  { %252 = vmatpush3.bf16.msra.mxu0 %v272_v2  ;;  %v218_v21 = vld [vmem:[%s370_s4] ss:$0 sm:$0xff] }
   0x7   :  { %253 = vmatprep.subr.bf16.mxu0 %v279_v0  ;;  %v44_v14 = vadd.f32 %v217_v13, %v35_v10  ;;  %v45_v15 = vadd.f32 %v217_v13, %v36_v11 }
   0x9   :  { %v46_v17 = vmax.f32 %v44_v14, 0.0  ;;  %v47_v18 = vmax.f32 %v45_v15, 0.0 }
   0xa   :  { %254 = vmatpush3.bf16.msra.mxu0 %v273_v3 }
   0xb   :  { %255 = vmatprep.subr.bf16.mxu0 %v279_v0  ;;  %v48_v20 = vpack.c.bf16 %v47_v18, %v46_v17 }
   0xe   :  { %256 = vmatpush3.bf16.msra.mxu0 %v274_v4 }
   0xf   :  { %257 = vmatprep.subr.bf16.mxu0 %v279_v0 }
  0x12   :  { %258 = vmatpush3.bf16.msra.mxu0 %v275_v8 }
  0x13   :  { %259 = vmatprep.subr.bf16.mxu0 %v279_v0 }
  0x16   :  { %260 = vmatpush3.bf16.msra.mxu0 %v276_v12 }
  0x17   :  { %261 = vmatprep.subr.bf16.mxu0 %v279_v0 }
  0x1a   :  { %262 = vmatpush3.bf16.msra.mxu0 %v277_v16 }
  0x1b   :  { %263 = vmatprep.subr.bf16.mxu0 %v279_v0 }
  0x1e   :  { %264 = vmatpush3.bf16.msra.mxu0 %v278_v19 }
  0x21   :  { %266 = vmatmul.mubr.bf16.vlgmr.msra.gmra.mrb[0].mxu0 %v48_v20 }
  0xf4   :  { %v154_v22 = vpop.f32.mrb[0].mxu0 }
  0xf5   :  { %v155_v23 = vadd.f32 %v218_v21, %v154_v22  ;;  %v267_v24 = vpop.f32.mrb[1].mxu0 }
  0xf6   :  { %v157_v25 = vpop.f32.mrb[2].mxu0 }
  0xf7   :  { %v158_v26 = vadd.f32 %v218_v21, %v157_v25  ;;  %v268_v27 = vpop.f32.mrb[3].mxu0  ;;  %v194_v28 = vmul.f32 %v155_v23, %v155_v23 }
  0xf9   :  { %v238_v29 = vpack.c.bf16 %v158_v26, %v155_v23  ;;  %v186_v30 = vadd.f32 %v158_v26, %v155_v23  ;;  %v195_v31 = vmul.f32 %v158_v26, %v158_v26 }
  0xfb   :  { %239 = vst [vmem:[%s371_s5] sm:$0xff] %v238_v29   ;;  %v187_v32 = vrot.slane %v186_v30, 4  ;;  %v196_v33 = vadd.f32 %v195_v31, %v194_v28 }
  0xfd   :  { %v188_v34 = vadd.f32 %v187_v32, %v186_v30  ;;  %v197_v35 = vrot.slane %v196_v33, 4 }
  0xff   :  { %v189_v36 = vrot.slane %v188_v34, 2  ;;  %v198_v37 = vadd.f32 %v197_v35, %v196_v33 }
 0x101   :  { %v190_v38 = vadd.f32 %v189_v36, %v188_v34  ;;  %v199_v39 = vrot.slane %v198_v37, 2 }
 0x103   :  { %v191_v40 = vrot.slane %v190_v38, 1  ;;  %v200_v41 = vadd.f32 %v199_v39, %v198_v37 }
 0x105   :  { %v192_v42 = vadd.f32 %v191_v40, %v190_v38  ;;  %v201_v43 = vrot.slane %v200_v41, 1 }
 0x107   :  { %193 = vst [vmem:[%s372_s6] sm:$0x1] %v192_v42  ;;  %v202_v44 = vadd.f32 %v201_v43, %v200_v41 }
 0x109   :  { %203 = vst [vmem:[%s373_s7] sm:$0x1] %v202_v44 }

// kernel: mlp_forward.3
= control target key start
LH: loop header
LB: loop body
LE: loop exit
PB: predicated region body
PF: predicated region fallthrough
CT: control target
= control target key end

     0   :  { %v245_v0 = vmov 0.0   ;;  %vm246_vm0 = vmmov 0   ;;  %s319_s1 = inlined_call_operand.vmem [shape: bf16[128,128], index: 1, kind: input, shape index: {}]   ;;  %s320_s0 = inlined_call_operand.vmem [shape: f32[16,128], index: 0, kind: input, shape index: {}]   ;;  %s321_s2 = inlined_call_operand.vmem [shape: f32[1,128], index: 2, kind: input, shape index: {}]   ;;  %s322_s3 = inlined_call_operand.vmem [shape: bf16[16,128], index: 3, kind: output, shape index: {0}]   ;;  %s323_s4 = inlined_call_operand.vmem [shape: f32[1,1,128], index: 4, kind: output, shape index: {1}]   ;;  %s324_s5 = inlined_call_operand.vmem [shape: f32[1,1,128], index: 5, kind: output, shape index: {2}]  }
   0x1   :  { %215 = vmatprep.subr.bf16.mxu0 %v245_v0  ;;  %v237_v1 = vld [vmem:[%s319_s1] sm:$0xff]   ;;  %231 = vmatprep.mubr.msk.bf16.mxu0 %vm246_vm0, %v245_v0  ;;  %v238_v2 = vld [vmem:[%s319_s1 + $0x8] sm:$0xff]   ;;  %v239_v3 = vld [vmem:[%s319_s1 + $0x10] sm:$0xff]  }
   0x2   :  { %216 = vmatpush3.bf16.msra.mxu0 %v237_v1  ;;  %v240_v4 = vld [vmem:[%s319_s1 + $0x18] sm:$0xff]   ;;  %v241_v5 = vld [vmem:[%s319_s1 + $0x20] sm:$0xff]   ;;  %v242_v6 = vld [vmem:[%s319_s1 + $0x28] sm:$0xff]  }
   0x3   :  { %217 = vmatprep.subr.bf16.mxu0 %v245_v0  ;;  %v243_v7 = vld [vmem:[%s319_s1 + $0x30] sm:$0xff]   ;;  %v244_v8 = vld [vmem:[%s319_s1 + $0x38] sm:$0xff]   ;;  %v18_v9 = vld [vmem:[%s320_s0] sm:$0xff] }
   0x4   :  { %v19_v10 = vld [vmem:[%s320_s0 + $0x8] sm:$0xff]  ;;  %v188_v12 = vld [vmem:[%s321_s2] ss:$0 sm:$0xff] }
   0x5   :  { %v20_v11 = vpack.c.bf16 %v19_v10, %v18_v9 }
   0x6   :  { %218 = vmatpush3.bf16.msra.mxu0 %v238_v2 }
   0x7   :  { %219 = vmatprep.subr.bf16.mxu0 %v245_v0 }
   0xa   :  { %220 = vmatpush3.bf16.msra.mxu0 %v239_v3 }
   0xb   :  { %221 = vmatprep.subr.bf16.mxu0 %v245_v0 }
   0xe   :  { %222 = vmatpush3.bf16.msra.mxu0 %v240_v4 }
   0xf   :  { %223 = vmatprep.subr.bf16.mxu0 %v245_v0 }
  0x12   :  { %224 = vmatpush3.bf16.msra.mxu0 %v241_v5 }
  0x13   :  { %225 = vmatprep.subr.bf16.mxu0 %v245_v0 }
  0x16   :  { %226 = vmatpush3.bf16.msra.mxu0 %v242_v6 }
  0x17   :  { %227 = vmatprep.subr.bf16.mxu0 %v245_v0 }
  0x1a   :  { %228 = vmatpush3.bf16.msra.mxu0 %v243_v7 }
  0x1b   :  { %229 = vmatprep.subr.bf16.mxu0 %v245_v0 }
  0x1e   :  { %230 = vmatpush3.bf16.msra.mxu0 %v244_v8 }
  0x21   :  { %232 = vmatmul.mubr.bf16.vlgmr.msra.gmra.mrb[0].mxu0 %v20_v11 }
  0xf4   :  { %v126_v13 = vpop.f32.mrb[0].mxu0 }
  0xf5   :  { %v127_v14 = vadd.f32 %v188_v12, %v126_v13  ;;  %v233_v15 = vpop.f32.mrb[1].mxu0 }
  0xf6   :  { %v129_v16 = vpop.f32.mrb[2].mxu0 }
  0xf7   :  { %v130_v17 = vadd.f32 %v188_v12, %v129_v16  ;;  %v234_v18 = vpop.f32.mrb[3].mxu0  ;;  %v166_v19 = vmul.f32 %v127_v14, %v127_v14 }
  0xf9   :  { %v204_v20 = vpack.c.bf16 %v130_v17, %v127_v14  ;;  %v158_v21 = vadd.f32 %v130_v17, %v127_v14  ;;  %v167_v22 = vmul.f32 %v130_v17, %v130_v17 }
  0xfb   :  { %205 = vst [vmem:[%s322_s3] sm:$0xff] %v204_v20   ;;  %v159_v23 = vrot.slane %v158_v21, 4  ;;  %v168_v24 = vadd.f32 %v167_v22, %v166_v19 }
  0xfd   :  { %v160_v25 = vadd.f32 %v159_v23, %v158_v21  ;;  %v169_v26 = vrot.slane %v168_v24, 4 }
  0xff   :  { %v161_v27 = vrot.slane %v160_v25, 2  ;;  %v170_v28 = vadd.f32 %v169_v26, %v168_v24 }
 0x101   :  { %v162_v29 = vadd.f32 %v161_v27, %v160_v25  ;;  %v171_v30 = vrot.slane %v170_v28, 2 }
 0x103   :  { %v163_v31 = vrot.slane %v162_v29, 1  ;;  %v172_v32 = vadd.f32 %v171_v30, %v170_v28 }
 0x105   :  { %v164_v33 = vadd.f32 %v163_v31, %v162_v29  ;;  %v173_v34 = vrot.slane %v172_v32, 1 }
 0x107   :  { %165 = vst [vmem:[%s323_s4] sm:$0x1] %v164_v33  ;;  %v174_v35 = vadd.f32 %v173_v34, %v172_v32 }
 0x109   :  { %175 = vst [vmem:[%s324_s5] sm:$0x1] %v174_v35 }

// kernel: mlp_forward.5
= control target key start
LH: loop header
LB: loop body
LE: loop exit
PB: predicated region body
PF: predicated region fallthrough
CT: control target
= control target key end

     0   :  { %v218_v0 = vmov 0.0   ;;  %vm219_vm0 = vmmov 0   ;;  %s292_s3 = inlined_call_operand.vmem [shape: bf16[128,128], index: 3, kind: input, shape index: {}]   ;;  %s293_s0 = inlined_call_operand.vmem [shape: bf16[16,128], index: 0, kind: input, shape index: {}]   ;;  %s294_s1 = inlined_call_operand.vmem [shape: f32[1,128], index: 1, kind: input, shape index: {}]   ;;  %s295_s2 = inlined_call_operand.vmem [shape: f32[1,128], index: 2, kind: input, shape index: {}]   ;;  %s296_s4 = inlined_call_operand.vmem [shape: f32[1,128], index: 4, kind: input, shape index: {}]   ;;  %s297_s5 = inlined_call_operand.vmem [shape: f32[16,128], index: 5, kind: output, shape index: {}]  }
   0x1   :  { %188 = vmatprep.subr.bf16.mxu0 %v218_v0  ;;  %v210_v1 = vld [vmem:[%s292_s3] sm:$0xff]   ;;  %204 = vmatprep.mubr.msk.bf16.mxu0 %vm219_vm0, %v218_v0  ;;  %v211_v2 = vld [vmem:[%s292_s3 + $0x8] sm:$0xff]   ;;  %v212_v3 = vld [vmem:[%s292_s3 + $0x10] sm:$0xff]  }
   0x2   :  { %189 = vmatpush3.bf16.msra.mxu0 %v210_v1  ;;  %v213_v4 = vld [vmem:[%s292_s3 + $0x18] sm:$0xff]   ;;  %v176_v5 = vld [vmem:[%s293_s0] sm:$0xff]   ;;  %v215_v12 = vld [vmem:[%s292_s3 + $0x28] sm:$0xff]  }
   0x3   :  { %190 = vmatprep.subr.bf16.mxu0 %v218_v0  ;;  %v177_v6 = vunpack.c.l.bf16 %v176_v5  ;;  %v178_v7 = vunpack.c.h.bf16 %v176_v5  ;;  %v214_v8 = vld [vmem:[%s292_s3 + $0x20] sm:$0xff]   ;;  %v216_v16 = vld [vmem:[%s292_s3 + $0x30] sm:$0xff]   ;;  %v217_v19 = vld [vmem:[%s292_s3 + $0x38] sm:$0xff]  }
   0x4   :  { %v164_v9 = vld [vmem:[%s294_s1] ss:$0 sm:$0xff] }
   0x5   :  { %v32_v10 = vmul.f32 %v177_v6, %v164_v9  ;;  %v33_v11 = vmul.f32 %v178_v7, %v164_v9  ;;  %v165_v13 = vld [vmem:[%s295_s2] ss:$0 sm:$0xff] }
   0x6   :  { %191 = vmatpush3.bf16.msra.mxu0 %v211_v2  ;;  %v166_v21 = vld [vmem:[%s296_s4] ss:$0 sm:$0xff] }
   0x7   :  { %192 = vmatprep.subr.bf16.mxu0 %v218_v0  ;;  %v41_v14 = vadd.f32 %v165_v13, %v32_v10  ;;  %v42_v15 = vadd.f32 %v165_v13, %v33_v11 }
   0x9   :  { %v43_v17 = vmax.f32 %v41_v14, 0.0  ;;  %v44_v18 = vmax.f32 %v42_v15, 0.0 }
   0xa   :  { %193 = vmatpush3.bf16.msra.mxu0 %v212_v3 }
   0xb   :  { %194 = vmatprep.subr.bf16.mxu0 %v218_v0  ;;  %v45_v20 = vpack.c.bf16 %v44_v18, %v43_v17 }
   0xe   :  { %195 = vmatpush3.bf16.msra.mxu0 %v213_v4 }
   0xf   :  { %196 = vmatprep.subr.bf16.mxu0 %v218_v0 }
  0x12   :  { %197 = vmatpush3.bf16.msra.mxu0 %v214_v8 }
  0x13   :  { %198 = vmatprep.subr.bf16.mxu0 %v218_v0 }
  0x16   :  { %199 = vmatpush3.bf16.msra.mxu0 %v215_v12 }
  0x17   :  { %200 = vmatprep.subr.bf16.mxu0 %v218_v0 }
  0x1a   :  { %201 = vmatpush3.bf16.msra.mxu0 %v216_v16 }
  0x1b   :  { %202 = vmatprep.subr.bf16.mxu0 %v218_v0 }
  0x1e   :  { %203 = vmatpush3.bf16.msra.mxu0 %v217_v19 }
  0x21   :  { %205 = vmatmul.mubr.bf16.vlgmr.msra.gmra.mrb[0].mxu0 %v45_v20 }
  0xf4   :  { %v151_v22 = vpop.f32.mrb[0].mxu0 }
  0xf5   :  { %v152_v23 = vadd.f32 %v166_v21, %v151_v22  ;;  %v206_v24 = vpop.f32.mrb[1].mxu0 }
  0xf6   :  { %v154_v25 = vpop.f32.mrb[2].mxu0 }
  0xf7   :  { %158 = vst [vmem:[%s297_s5] sm:$0xff] %v152_v23  ;;  %v155_v26 = vadd.f32 %v166_v21, %v154_v25  ;;  %v207_v27 = vpop.f32.mrb[3].mxu0 }
  0xf9   :  { %159 = vst [vmem:[%s297_s5 + $0x8] sm:$0xff] %v155_v26 }

</bundles_post_ra>
